<compile_context>
chip_gen: v5e
topology: v5e:2x2
jax: 0.10.0
libtpu: 0.0.40
codegen_flags: <defaults>
</compile_context>

<pallas_src>
import functools

import numpy as np

import jax
import jax.numpy as jnp
from jax.experimental import pallas as pl
from jax.experimental.pallas import tpu as pltpu

_LANE = 128
_SUBLANE = 8
_MAX_TB = 512
_VMEM_LIMIT = 32 * 1024 * 1024  # bytes; explicit so larger tiles fit on v5e


def _round_up(n: int, m: int) -> int:
    return ((n + m - 1) // m) * m


def _batch_tiling(b: int) -> tuple[int, int]:
    """Return (padded batch, batch tile).

    - tiny batches: one tight tile (no wasted rows)
    - mid batches: exactly 2 tiles so v7x's two TensorCores both get work
    - large batches: TB=512 (best measured HBM-roofline fraction)
    """
    bp = _round_up(b, _SUBLANE)
    if bp <= _SUBLANE:
        return bp, bp
    if bp <= 2 * _MAX_TB:
        half = _round_up((bp + 1) // 2, _SUBLANE)
        return 2 * half, half
    tb = _MAX_TB
    return _round_up(bp, tb), tb


# ---------------------------------------------------------------------------
# Kernel 1: fused twin-MLP forward + per-row routing.
#   layer 1 :  h = relu(x @ [w1a | w1b] + [b1a | b1b])              [TB, 2H]
#   routing :  hg0 = h[:, :H] * (1-m),  hg1 = h[:, H:] * m   (lane-aligned)
#   layer 2 :  o   = hg0 @ w2a + hg1 @ w2b + (b2a + m*(b2b-b2a))    [TB, Cp]
# The zeroed half contributes exactly 0 to its matmul, so this equals
# where(m, model1(x), model0(x)) with a single fused layer-1 MXU pass.
# ---------------------------------------------------------------------------
def _twin_fused_kernel(x_ref, m_ref, w1_ref, b1_ref, w2a_ref, w2b_ref,
                       b2a_ref, b2d_ref, out_ref):
    # x [TB, D] f32 (cast to bf16 here), m [TB, 1] f32 (1.0 -> use model 1),
    # w1 [D, 2H] bf16, b1 [1, 2H] f32, w2a/w2b [H, Cp] bf16,
    # b2a/b2d [1, Cp] f32, out [TB, Cp] f32.
    xb = x_ref[...].astype(w1_ref.dtype)                         # in-kernel cast
    h = jnp.dot(xb, w1_ref[...], preferred_element_type=jnp.float32)
    h = jnp.maximum(h + b1_ref[...], 0.0)                        # [TB, 2H] f32

    m = m_ref[...]                                               # [TB, 1] f32
    hdim = w2a_ref.shape[0]                                      # H (static)
    hg0 = (h[:, :hdim] * (1.0 - m)).astype(w2a_ref.dtype)        # lane-aligned
    hg1 = (h[:, hdim:] * m).astype(w2b_ref.dtype)                # slices (H=128k)

    o = jnp.dot(hg0, w2a_ref[...], preferred_element_type=jnp.float32)
    o = o + jnp.dot(hg1, w2b_ref[...], preferred_element_type=jnp.float32)
    out_ref[...] = (o + b2a_ref[...] + m * b2d_ref[...]).astype(out_ref.dtype)


# ---------------------------------------------------------------------------
# Kernel 2: single-model MLP forward (training path / degenerate eval paths).
# ---------------------------------------------------------------------------
def _single_mlp_kernel(x_ref, w1_ref, b1_ref, w2_ref, b2_ref, out_ref):
    xb = x_ref[...].astype(w1_ref.dtype)
    h = jnp.dot(xb, w1_ref[...], preferred_element_type=jnp.float32)
    h = jnp.maximum(h + b1_ref[...], 0.0).astype(w2_ref.dtype)
    o = jnp.dot(h, w2_ref[...], preferred_element_type=jnp.float32)
    out_ref[...] = (o + b2_ref[...]).astype(out_ref.dtype)


# ---------------------------------------------------------------------------
# pallas_call wrappers (batch-tiled grid, weights resident in VMEM)
# ---------------------------------------------------------------------------
def _wspec(shape):
    # Constant index_map: same weight block every grid step (stays resident).
    return pl.BlockSpec(shape, lambda i: (0, 0))


@functools.partial(jax.jit, static_argnames=("tb",))
def _twin_forward(x, mask, w1, b1, w2a, w2b, b2a, b2d, *, tb):
    bp, d = x.shape
    h2 = w1.shape[1]
    cp = w2a.shape[1]
    cost = pl.CostEstimate(
        flops=2 * bp * (d * h2 + h2 * cp),
        transcendentals=0,
        bytes_accessed=(x.size * 4 + mask.size * 4
                        + (w1.size + w2a.size + w2b.size) * 2
                        + (b1.size + b2a.size + b2d.size) * 4
                        + bp * cp * 4),
    )
    return pl.pallas_call(
        _twin_fused_kernel,
        out_shape=jax.ShapeDtypeStruct((bp, cp), jnp.float32),
        grid_spec=pltpu.PrefetchScalarGridSpec(
            num_scalar_prefetch=0,
            grid=(bp // tb,),
            in_specs=[
                pl.BlockSpec((tb, d), lambda i: (i, 0)),     # x: batch-tiled f32
                pl.BlockSpec((tb, 1), lambda i: (i, 0)),     # mask: batch-tiled
                _wspec((d, h2)), _wspec((1, h2)),            # fused layer-1 W/b
                _wspec((h2 // 2, cp)), _wspec((h2 // 2, cp)),  # layer-2 halves
                _wspec((1, cp)), _wspec((1, cp)),            # b2a, (b2b - b2a)
            ],
            out_specs=pl.BlockSpec((tb, cp), lambda i: (i, 0)),
        ),
        compiler_params=pltpu.CompilerParams(
            dimension_semantics=("parallel",),
            vmem_limit_bytes=_VMEM_LIMIT,
        ),
        cost_estimate=cost,
    )(x, mask, w1, b1, w2a, w2b, b2a, b2d)


@functools.partial(jax.jit, static_argnames=("tb",))
def _single_forward(x, w1, b1, w2, b2, *, tb):
    bp, d = x.shape
    h = w1.shape[1]
    cp = w2.shape[1]
    cost = pl.CostEstimate(
        flops=2 * bp * (d * h + h * cp),
        transcendentals=0,
        bytes_accessed=(x.size * 4 + (w1.size + w2.size) * 2
                        + (b1.size + b2.size) * 4 + bp * cp * 4),
    )
    return pl.pallas_call(
        _single_mlp_kernel,
        out_shape=jax.ShapeDtypeStruct((bp, cp), jnp.float32),
        grid_spec=pltpu.PrefetchScalarGridSpec(
            num_scalar_prefetch=0,
            grid=(bp // tb,),
            in_specs=[
                pl.BlockSpec((tb, d), lambda i: (i, 0)),
                _wspec((d, h)), _wspec((1, h)),
                _wspec((h, cp)), _wspec((1, cp)),
            ],
            out_specs=pl.BlockSpec((tb, cp), lambda i: (i, 0)),
        ),
        compiler_params=pltpu.CompilerParams(
            dimension_semantics=("parallel",),
            vmem_limit_bytes=_VMEM_LIMIT,
        ),
        cost_estimate=cost,
    )(x, w1, b1, w2, b2)


# ---------------------------------------------------------------------------
# Python-side module mirroring RHOLOSSTwinModelModyn semantics
# ---------------------------------------------------------------------------
class RhoLossTwinModelPallas:
    # TODO(synk): the original module instantiates an arbitrary configured
    # rho_real_model_class via dynamic import; a fixed MLP classifier stands
    # in for it here.  Seen-id set bookkeeping stays on the host, as in torch.

    def __init__(self, in_dim: int, hidden: int, num_classes: int, key):
        ks = jax.random.split(key, 8)

        def init_mlp(k0, k1, k2, k3):
            w1 = jax.random.normal(k0, (in_dim, hidden), jnp.float32) * 0.02
            b1 = jax.random.normal(k1, (1, hidden), jnp.float32) * 0.02
            w2 = jax.random.normal(k2, (hidden, num_classes), jnp.float32) * 0.02
            b2 = jax.random.normal(k3, (1, num_classes), jnp.float32) * 0.02
            return (w1, b1, w2, b2)

        # two independent "real" models, like nn.ModuleList([...])
        self._params_f32 = [init_mlp(*ks[:4]), init_mlp(*ks[4:])]
        self._models_seen_ids: list[set[int]] = [set(), set()]
        self._current_model = 0
        self.training = False

        self._num_classes = num_classes
        self._c_pad = _round_up(max(num_classes, _LANE), _LANE)
        self._prepare_device_params()

    def _prepare_device_params(self):
        cp = self._c_pad

        def pad_c(a):
            return jnp.pad(a, ((0, 0), (0, cp - a.shape[-1])))

        # per-model params for the single-model kernel
        self._single_params = []
        for (w1, b1, w2, b2) in self._params_f32:
            self._single_params.append((
                w1.astype(jnp.bfloat16),                  # [D, H]  bf16
                b1,                                       # [1, H]  f32
                pad_c(w2).astype(jnp.bfloat16),           # [H, Cp] bf16
                pad_c(b2),                                # [1, Cp] f32
            ))

        # fused params for the twin kernel
        (w1a, b1a, w2a, b2a), (w1b, b1b, w2b, b2b) = self._params_f32
        b2a_p, b2b_p = pad_c(b2a), pad_c(b2b)
        self._twin_params = (
            jnp.concatenate([w1a, w1b], axis=1).astype(jnp.bfloat16),  # [D, 2H]
            jnp.concatenate([b1a, b1b], axis=1),                       # [1, 2H]
            pad_c(w2a).astype(jnp.bfloat16),                           # [H, Cp]
            pad_c(w2b).astype(jnp.bfloat16),                           # [H, Cp]
            b2a_p,                                                     # [1, Cp]
            b2b_p - b2a_p,                                             # [1, Cp]
        )

    # -- forward --------------------------------------------------------
    def __call__(self, data_nchw, sample_ids):
        assert sample_ids is not None
        b = data_nchw.shape[0]
        x = jnp.asarray(data_nchw, jnp.float32).reshape(b, -1)
        bp, tb = _batch_tiling(b)
        xp = jnp.pad(x, ((0, bp - b), (0, 0)))   # stays f32; cast happens in-kernel

        if self.training:
            # training: only the active model runs (single-model kernel).
            self._models_seen_ids[self._current_model].update(sample_ids)
            out = _single_forward(
                xp, *self._single_params[self._current_model], tb=tb)
            return out[:b, :self._num_classes]

        # eval: route each sample away from the model that trained on it.
        seen0 = np.fromiter((sid in self._models_seen_ids[0] for sid in sample_ids),
                            dtype=bool, count=b)
        seen1 = np.fromiter((sid in self._models_seen_ids[1] for sid in sample_ids),
                            dtype=bool, count=b)
        if not seen0.any():
            out = _single_forward(xp, *self._single_params[0], tb=tb)
        elif not seen1.any():
            out = _single_forward(xp, *self._single_params[1], tb=tb)
        else:
            mask_np = np.zeros((bp, 1), np.float32)
            mask_np[:b, 0] = seen0.astype(np.float32)   # 1.0 -> use model 1
            mask = jnp.asarray(mask_np)
            out = _twin_forward(xp, mask, *self._twin_params, tb=tb)
        return out[:b, :self._num_classes]


# ---------------------------------------------------------------------------
# Reference (pure jnp, f32) for sanity checking
# ---------------------------------------------------------------------------
def _ref_mlp(x, p):
    w1, b1, w2, b2 = p
    h = jnp.maximum(x @ w1 + b1, 0.0)
    return h @ w2 + b2


if __name__ == "__main__":
    key = jax.random.PRNGKey(0)
    kp, kx = jax.random.split(key)

    B, C_IN, HW = 8, 4, 16                 # NCHW input [8, 4, 16, 16]
    D = C_IN * HW * HW                     # 1024
    HIDDEN, NUM_CLASSES = 128, 10

    model = RhoLossTwinModelPallas(D, HIDDEN, NUM_CLASSES, kp)
    x = jax.random.normal(kx, (B, C_IN, HW, HW), jnp.float32)
    sample_ids = list(range(B))
    x_flat = x.reshape(B, -1)

    # --- eval path with mixed routing (twin kernel) ---------------------
    model._models_seen_ids[0].update({0, 1, 2, 3})   # model 0 saw ids 0..3
    model._models_seen_ids[1].update({4, 5})         # model 1 saw ids 4..5
    model.training = False

    out_eval = jax.block_until_ready(model(x, sample_ids))
    o0 = _ref_mlp(x_flat, model._params_f32[0])
    o1 = _ref_mlp(x_flat, model._params_f32[1])
    seen0 = jnp.asarray([sid in model._models_seen_ids[0] for sid in sample_ids])
    ref_eval = jnp.where(seen0[:, None], o1, o0)
    assert out_eval.shape == (B, NUM_CLASSES)
    assert jnp.allclose(out_eval, ref_eval, atol=1e-2, rtol=1e-2), (
        float(jnp.max(jnp.abs(out_eval - ref_eval))))

    # --- eval path, degenerate branch (model 1 saw nothing) -------------
    model2 = RhoLossTwinModelPallas(D, HIDDEN, NUM_CLASSES, kp)
    model2._models_seen_ids[0].update({0, 1})
    model2.training = False
    out_deg = jax.block_until_ready(model2(x, sample_ids))
    ref_deg = _ref_mlp(x_flat, model2._params_f32[1])
    assert jnp.allclose(out_deg, ref_deg, atol=1e-2, rtol=1e-2)

    # --- training path (single-model kernel) ----------------------------
    model.training = True
    model._current_model = 1
    train_ids = list(range(100, 100 + B))
    out_train = jax.block_until_ready(model(x, train_ids))
    ref_train = _ref_mlp(x_flat, model._params_f32[1])
    assert out_train.shape == (B, NUM_CLASSES)
    assert jnp.allclose(out_train, ref_train, atol=1e-2, rtol=1e-2)
    assert set(train_ids).issubset(model._models_seen_ids[1])

    print("KERNEL_OK")
</pallas_src>

<mosaic_0001>
module attributes {stable_mosaic.version = 11 : i64} {
  func.func @_twin_fused_kernel(%arg0: i32, %arg1: memref<8x1024xf32, #tpu.memory_space<vmem>>, %arg2: memref<8x1xf32, #tpu.memory_space<vmem>>, %arg3: memref<1024x256xbf16, #tpu.memory_space<vmem>>, %arg4: memref<1x256xf32, #tpu.memory_space<vmem>>, %arg5: memref<128x128xbf16, #tpu.memory_space<vmem>>, %arg6: memref<128x128xbf16, #tpu.memory_space<vmem>>, %arg7: memref<1x128xf32, #tpu.memory_space<vmem>>, %arg8: memref<1x128xf32, #tpu.memory_space<vmem>>, %arg9: memref<8x128xf32, #tpu.memory_space<vmem>>) attributes {dimension_semantics = [#tpu.dimension_semantics<parallel>], iteration_bounds = array<i64: 1>, scalar_prefetch = 0 : i64, scratch_operands = 0 : i64, tpu.core_type = #tpu.core_type<tc>, window_params = [{transform_indices = @transform_0, window_bounds = array<i64: 8, 1024>}, {transform_indices = @transform_1, window_bounds = array<i64: 8, 1>}, {pipeline_mode = #tpu.pipeline_mode<synchronous>, transform_indices = @transform_2, window_bounds = array<i64: 1024, 256>}, {pipeline_mode = #tpu.pipeline_mode<synchronous>, transform_indices = @transform_3, window_bounds = array<i64: 1, 256>}, {pipeline_mode = #tpu.pipeline_mode<synchronous>, transform_indices = @transform_4, window_bounds = array<i64: 128, 128>}, {pipeline_mode = #tpu.pipeline_mode<synchronous>, transform_indices = @transform_5, window_bounds = array<i64: 128, 128>}, {pipeline_mode = #tpu.pipeline_mode<synchronous>, transform_indices = @transform_6, window_bounds = array<i64: 1, 128>}, {pipeline_mode = #tpu.pipeline_mode<synchronous>, transform_indices = @transform_7, window_bounds = array<i64: 1, 128>}, {transform_indices = @transform_8, window_bounds = array<i64: 8, 128>}]} {
    %c0 = arith.constant 0 : index
    %c0_0 = arith.constant 0 : index
    %0 = vector.load %arg1[%c0, %c0_0] : memref<8x1024xf32, #tpu.memory_space<vmem>>, vector<8x1024xf32>
    %1 = arith.truncf %0 : vector<8x1024xf32> to vector<8x1024xbf16>
    %c0_1 = arith.constant 0 : index
    %c0_2 = arith.constant 0 : index
    %2 = vector.load %arg3[%c0_1, %c0_2] : memref<1024x256xbf16, #tpu.memory_space<vmem>>, vector<1024x256xbf16>
    %cst = arith.constant dense<0.000000e+00> : vector<8x256xf32>
    %3 = tpu.matmul %1, %2, %cst {dimension_numbers = #tpu.dot_dimension_numbers<[1], [0], [0], [1], [0, 0, 1, 1], [], []>} : vector<8x1024xbf16>, vector<1024x256xbf16>, vector<8x256xf32> -> vector<8x256xf32>
    %c0_3 = arith.constant 0 : index
    %c0_4 = arith.constant 0 : index
    %4 = vector.load %arg4[%c0_3, %c0_4] : memref<1x256xf32, #tpu.memory_space<vmem>>, vector<1x256xf32>
    %5 = vector.broadcast %4 : vector<1x256xf32> to vector<8x256xf32>
    %6 = arith.addf %3, %5 : vector<8x256xf32>
    %cst_5 = arith.constant 0.000000e+00 : f32
    %7 = vector.broadcast %cst_5 : f32 to vector<8x256xf32>
    %8 = arith.maximumf %6, %7 : vector<8x256xf32>
    %c0_6 = arith.constant 0 : index
    %c0_7 = arith.constant 0 : index
    %9 = vector.load %arg2[%c0_6, %c0_7] : memref<8x1xf32, #tpu.memory_space<vmem>>, vector<8x1xf32>
    %10 = vector.extract_strided_slice %8 {offsets = [0, 0], sizes = [8, 128], strides = [1, 1]} : vector<8x256xf32> to vector<8x128xf32>
    %cst_8 = arith.constant 1.000000e+00 : f32
    %11 = vector.broadcast %cst_8 : f32 to vector<8x1xf32>
    %12 = arith.subf %11, %9 : vector<8x1xf32>
    %13 = vector.broadcast %12 : vector<8x1xf32> to vector<8x128xf32>
    %14 = arith.mulf %10, %13 : vector<8x128xf32>
    %15 = arith.truncf %14 : vector<8x128xf32> to vector<8x128xbf16>
    %16 = vector.extract_strided_slice %8 {offsets = [0, 128], sizes = [8, 128], strides = [1, 1]} : vector<8x256xf32> to vector<8x128xf32>
    %17 = vector.broadcast %9 : vector<8x1xf32> to vector<8x128xf32>
    %18 = arith.mulf %16, %17 : vector<8x128xf32>
    %19 = arith.truncf %18 : vector<8x128xf32> to vector<8x128xbf16>
    %c0_9 = arith.constant 0 : index
    %c0_10 = arith.constant 0 : index
    %20 = vector.load %arg5[%c0_9, %c0_10] : memref<128x128xbf16, #tpu.memory_space<vmem>>, vector<128x128xbf16>
    %cst_11 = arith.constant dense<0.000000e+00> : vector<8x128xf32>
    %21 = tpu.matmul %15, %20, %cst_11 {dimension_numbers = #tpu.dot_dimension_numbers<[1], [0], [0], [1], [0, 0, 1, 1], [], []>} : vector<8x128xbf16>, vector<128x128xbf16>, vector<8x128xf32> -> vector<8x128xf32>
    %c0_12 = arith.constant 0 : index
    %c0_13 = arith.constant 0 : index
    %22 = vector.load %arg6[%c0_12, %c0_13] : memref<128x128xbf16, #tpu.memory_space<vmem>>, vector<128x128xbf16>
    %cst_14 = arith.constant dense<0.000000e+00> : vector<8x128xf32>
    %23 = tpu.matmul %19, %22, %cst_14 {dimension_numbers = #tpu.dot_dimension_numbers<[1], [0], [0], [1], [0, 0, 1, 1], [], []>} : vector<8x128xbf16>, vector<128x128xbf16>, vector<8x128xf32> -> vector<8x128xf32>
    %24 = arith.addf %21, %23 : vector<8x128xf32>
    %c0_15 = arith.constant 0 : index
    %c0_16 = arith.constant 0 : index
    %25 = vector.load %arg7[%c0_15, %c0_16] : memref<1x128xf32, #tpu.memory_space<vmem>>, vector<1x128xf32>
    %26 = vector.broadcast %25 : vector<1x128xf32> to vector<8x128xf32>
    %27 = arith.addf %24, %26 : vector<8x128xf32>
    %c0_17 = arith.constant 0 : index
    %c0_18 = arith.constant 0 : index
    %28 = vector.load %arg8[%c0_17, %c0_18] : memref<1x128xf32, #tpu.memory_space<vmem>>, vector<1x128xf32>
    %29 = vector.broadcast %9 : vector<8x1xf32> to vector<8x128xf32>
    %30 = vector.broadcast %28 : vector<1x128xf32> to vector<8x128xf32>
    %31 = arith.mulf %29, %30 : vector<8x128xf32>
    %32 = arith.addf %27, %31 : vector<8x128xf32>
    %c0_19 = arith.constant 0 : index
    %c0_20 = arith.constant 0 : index
    %33 = vector.load %arg9[%c0_19, %c0_20] : memref<8x128xf32, #tpu.memory_space<vmem>>, vector<8x128xf32>
    tpu.vector_store %arg9[%c0_19, %c0_20], %32 {strides = array<i32>} : memref<8x128xf32, #tpu.memory_space<vmem>>, vector<8x128xf32>,
    return
  }
  func.func @transform_0(%arg0: i32) -> (i32, i32) {
    %c0_i32 = arith.constant 0 : i32
    %c0_i32_0 = arith.constant 0 : i32
    return %arg0, %c0_i32 : i32, i32
  }
  func.func @transform_1(%arg0: i32) -> (i32, i32) {
    %c0_i32 = arith.constant 0 : i32
    %c0_i32_0 = arith.constant 0 : i32
    return %arg0, %c0_i32 : i32, i32
  }
  func.func @transform_2(%arg0: i32) -> (i32, i32) {
    %c0_i32 = arith.constant 0 : i32
    %c0_i32_0 = arith.constant 0 : i32
    %c0_i32_1 = arith.constant 0 : i32
    return %c0_i32, %c0_i32_0 : i32, i32
  }
  func.func @transform_3(%arg0: i32) -> (i32, i32) {
    %c0_i32 = arith.constant 0 : i32
    %c0_i32_0 = arith.constant 0 : i32
    %c0_i32_1 = arith.constant 0 : i32
    return %c0_i32, %c0_i32_0 : i32, i32
  }
  func.func @transform_4(%arg0: i32) -> (i32, i32) {
    %c0_i32 = arith.constant 0 : i32
    %c0_i32_0 = arith.constant 0 : i32
    %c0_i32_1 = arith.constant 0 : i32
    return %c0_i32, %c0_i32_0 : i32, i32
  }
  func.func @transform_5(%arg0: i32) -> (i32, i32) {
    %c0_i32 = arith.constant 0 : i32
    %c0_i32_0 = arith.constant 0 : i32
    %c0_i32_1 = arith.constant 0 : i32
    return %c0_i32, %c0_i32_0 : i32, i32
  }
  func.func @transform_6(%arg0: i32) -> (i32, i32) {
    %c0_i32 = arith.constant 0 : i32
    %c0_i32_0 = arith.constant 0 : i32
    %c0_i32_1 = arith.constant 0 : i32
    return %c0_i32, %c0_i32_0 : i32, i32
  }
  func.func @transform_7(%arg0: i32) -> (i32, i32) {
    %c0_i32 = arith.constant 0 : i32
    %c0_i32_0 = arith.constant 0 : i32
    %c0_i32_1 = arith.constant 0 : i32
    return %c0_i32, %c0_i32_0 : i32, i32
  }
  func.func @transform_8(%arg0: i32) -> (i32, i32) {
    %c0_i32 = arith.constant 0 : i32
    %c0_i32_0 = arith.constant 0 : i32
    return %arg0, %c0_i32 : i32, i32
  }
}

</mosaic_0001>

<bundles_post_ra>
// kernel: _twin_forward.1
= control target key start
LH: loop header
LB: loop body
LE: loop exit
PB: predicated region body
PF: predicated region fallthrough
CT: control target
= control target key end

     0   :  { %13 = vsyncpa [#allocation3], 0  ;;  %s2271_s0 = inlined_call_operand.hbm [shape: f32[8,1024], index: 0, kind: input, shape index: {}]   ;;  %s2272_s1 = inlined_call_operand.vmem [shape: f32[8,1], index: 1, kind: input, shape index: {}]   ;;  %s2273_s2 = inlined_call_operand.hbm [shape: bf16[1024,256], index: 2, kind: input, shape index: {}]   ;;  %s2274_s3 = inlined_call_operand.vmem [shape: f32[1,256], index: 3, kind: input, shape index: {}]   ;;  %s2275_s4 = inlined_call_operand.hbm [shape: bf16[128,128], index: 4, kind: input, shape index: {}]   ;;  %s2276_s5 = inlined_call_operand.hbm [shape: bf16[128,128], index: 5, kind: input, shape index: {}]   ;;  %s2277_s6 = inlined_call_operand.vmem [shape: f32[1,128], index: 6, kind: input, shape index: {}]   ;;  %s2278_s7 = inlined_call_operand.vmem [shape: f32[1,128], index: 7, kind: input, shape index: {}]   ;;  %s2279_s8 = inlined_call_operand.hbm [shape: f32[8,128], index: 8, kind: output, shape index: {}]  }
   0x1   :  { %14 = vsyncpa [#allocation6], 0 }
   0x2   :  { %15 = vsyncpa [#allocation9], 0  ;;  %s34_s29 = sshll.u32 %s2273_s2, 4  ;;  %s35_s29 = int_to_ptr.hbm [resolvable:$true] %s34_s29 }
   0x3   :  { %16 = vsyncpa [#allocation4], 0  ;;  %s2153_s30 = smov [#allocation5]   ;;  %s22_s12 = sshll.u32 %s2271_s0, 4  ;;  %s23_s12 = int_to_ptr.hbm [resolvable:$true] %s22_s12 }
   0x4   :  { %s36_s9 = sshll.u32 %s2153_s30, 4  ;;  %s2154_s13 = smov 128   ;;  %s37_s9 = int_to_ptr.vmem [resolvable:$true] %s36_s9 }
   0x5   :  { %s2155_s14 = smov 8   ;;  %s2156_s15 = smov [#allocation2]  }
   0x6   :  { %42 = dma.hbm_to_vmem [thread:$0]  %s35_s29, 16384, %s37_s9, [#allocation6], %s2154_s13, %s2154_s13, %s2155_s14  }
   0x7   :  { %s24_s16 = sshll.u32 %s2156_s15, 4  ;;  %s49_s19 = sshll.u32 %s2275_s4, 4  ;;  %s25_s16 = int_to_ptr.vmem [resolvable:$true] %s24_s16  ;;  %s50_s19 = int_to_ptr.hbm [resolvable:$true] %s49_s19 }
   0x8   :  { %27 = dma.hbm_to_vmem [thread:$0]  %s23_s12, 1024, %s25_s16, [#allocation3]  }
   0x9   :  { %s2157_s2 = smov [#allocation7]   ;;  %s62_s0 = sshll.u32 %s2276_s5, 4  ;;  %s63_s0 = int_to_ptr.hbm [resolvable:$true] %s62_s0 }
   0xa   :  { %s51_s20 = sshll.u32 %s2157_s2, 4  ;;  %s2158_s23 = smov 64   ;;  %s52_s20 = int_to_ptr.vmem [resolvable:$true] %s51_s20 }
   0xb   :  { %s2159_s24 = smov 4   ;;  %s2160_s25 = smov [#allocation8]  }
   0xc   :  { %57 = dma.hbm_to_vmem [thread:$0]  %s50_s19, 1024, %s52_s20, [#allocation6], %s2158_s23, %s2158_s23, %s2159_s24  }
   0xd   :  { %s64_s26 = sshll.u32 %s2160_s25, 4  ;;  %s65_s26 = int_to_ptr.vmem [resolvable:$true] %s64_s26 }
   0xe   :  { %70 = dma.hbm_to_vmem [thread:$0]  %s63_s0, 1024, %s65_s26, [#allocation9], %s2158_s23, %s2158_s23, %s2159_s24  }
   0xf   :  { %2145 = dma.done.wait [#allocation3], 1024  }
  0x10   :  { %2146 = vsyncadd [#allocation3], 4294966272 }
  0x11   :  { %2147 = dma.done.wait [#allocation6], 17408  }
  0x12   :  { %2148 = vsyncadd [#allocation6], 4294949888 }
  0x13   :  { %2149 = dma.done.wait [#allocation9], 1024  }
  0x14   :  { %2150 = vsyncadd [#allocation9], 4294966272  ;;  %v1350_v0 = vld [vmem:[#allocation5 + $0x70] sm:$0xf]  ;;  %v1883_v1 = vld [vmem:[#allocation5 + $0x74] sm:$0xf0] }
  0x15   :  { %v1414_v2 = vld [vmem:[#allocation5 + $0xf0] sm:$0xf]  ;;  %v1351_v3 = vor.u32 %v1883_v1, %v1350_v0  ;;  %v1899_v4 = vld [vmem:[#allocation5 + $0xf4] sm:$0xf0]  ;;  %v1342_v11 = vld [vmem:[#allocation5 + $0x60] sm:$0xf] }
  0x16   :  { %v1478_v5 = vld [vmem:[#allocation5 + $0x170] sm:$0xf]  ;;  %v1915_v6 = vld [vmem:[#allocation5 + $0x174] sm:$0xf0]  ;;  %v1415_v7 = vor.u32 %v1899_v4, %v1414_v2  ;;  %v1881_v13 = vld [vmem:[#allocation5 + $0x64] sm:$0xf0] }
  0x17   :  { %v1479_v8 = vor.u32 %v1915_v6, %v1478_v5  ;;  %v1542_v9 = vld [vmem:[#allocation5 + $0x1f0] sm:$0xf]  ;;  %v1931_v10 = vld [vmem:[#allocation5 + $0x1f4] sm:$0xf0]  ;;  %881 = vmatpush.bf16.msra.mxu0 %v1351_v3  ;;  %v1406_v14 = vld [vmem:[#allocation5 + $0xe0] sm:$0xf]  ;;  %v1343_v16 = vor.u32 %v1881_v13, %v1342_v11 }
  0x18   :  { %v1543_v12 = vor.u32 %v1931_v10, %v1542_v9  ;;  %v1897_v15 = vld [vmem:[#allocation5 + $0xe4] sm:$0xf0]  ;;  %894 = vmatpush.bf16.msra.mxu1 %v1415_v7  ;;  %v1470_v18 = vld [vmem:[#allocation5 + $0x160] sm:$0xf]  ;;  %v1334_v23 = vld [vmem:[#allocation5 + $0x50] sm:$0xf] }
  0x19   :  { %907 = vmatpush.bf16.msra.mxu2 %v1479_v8  ;;  %v1407_v17 = vor.u32 %v1897_v15, %v1406_v14  ;;  %v1913_v19 = vld [vmem:[#allocation5 + $0x164] sm:$0xf0]  ;;  %v1534_v20 = vld [vmem:[#allocation5 + $0x1e0] sm:$0xf]  ;;  %v1879_v24 = vld [vmem:[#allocation5 + $0x54] sm:$0xf0] }
  0x1a   :  { %920 = vmatpush.bf16.msra.mxu3 %v1543_v12  ;;  %v1471_v21 = vor.u32 %v1913_v19, %v1470_v18  ;;  %v1929_v22 = vld [vmem:[#allocation5 + $0x1e4] sm:$0xf0]  ;;  %v1398_v26 = vld [vmem:[#allocation5 + $0xd0] sm:$0xf]  ;;  %v1895_v27 = vld [vmem:[#allocation5 + $0xd4] sm:$0xf0]  ;;  %v1335_v29 = vor.u32 %v1879_v24, %v1334_v23 }
  0x1b   :  { %v1535_v25 = vor.u32 %v1929_v22, %v1534_v20  ;;  %v1462_v28 = vld [vmem:[#allocation5 + $0x150] sm:$0xf]  ;;  %882 = vmatpush.bf16.msra.mxu0 %v1343_v16  ;;  %v1911_v30 = vld [vmem:[#allocation5 + $0x154] sm:$0xf0]  ;;  %v1399_v33 = vor.u32 %v1895_v27, %v1398_v26  ;;  %v1326_v35 = vld [vmem:[#allocation5 + $0x40] sm:$0xf] }
  0x1c   :  { %v1526_v31 = vld [vmem:[#allocation5 + $0x1d0] sm:$0xf]  ;;  %v1927_v32 = vld [vmem:[#allocation5 + $0x1d4] sm:$0xf0]  ;;  %895 = vmatpush.bf16.msra.mxu1 %v1407_v17  ;;  %v1463_v34 = vor.u32 %v1911_v30, %v1462_v28  ;;  %v1877_v36 = vld [vmem:[#allocation5 + $0x44] sm:$0xf0] }
  0x1d   :  { %908 = vmatpush.bf16.msra.mxu2 %v1471_v21  ;;  %v1390_v37 = vld [vmem:[#allocation5 + $0xc0] sm:$0xf]  ;;  %v1527_v38 = vor.u32 %v1927_v32, %v1526_v31  ;;  %v1893_v39 = vld [vmem:[#allocation5 + $0xc4] sm:$0xf0]  ;;  %v1327_v44 = vor.u32 %v1877_v36, %v1326_v35  ;;  %v1318_v47 = vld [vmem:[#allocation5 + $0x30] sm:$0xf] }
  0x1e   :  { %921 = vmatpush.bf16.msra.mxu3 %v1535_v25  ;;  %v1454_v40 = vld [vmem:[#allocation5 + $0x140] sm:$0xf]  ;;  %v1909_v41 = vld [vmem:[#allocation5 + $0x144] sm:$0xf0]  ;;  %v1391_v45 = vor.u32 %v1893_v39, %v1390_v37  ;;  %v1875_v48 = vld [vmem:[#allocation5 + $0x34] sm:$0xf0] }
  0x1f   :  { %v1518_v42 = vld [vmem:[#allocation5 + $0x1c0] sm:$0xf]  ;;  %v1925_v43 = vld [vmem:[#allocation5 + $0x1c4] sm:$0xf0]  ;;  %883 = vmatpush.bf16.msra.mxu0 %v1335_v29  ;;  %v1455_v46 = vor.u32 %v1909_v41, %v1454_v40  ;;  %v1382_v49 = vld [vmem:[#allocation5 + $0xb0] sm:$0xf]  ;;  %v1319_v56 = vor.u32 %v1875_v48, %v1318_v47 }
  0x20   :  { %896 = vmatpush.bf16.msra.mxu1 %v1399_v33  ;;  %v1519_v50 = vor.u32 %v1925_v43, %v1518_v42  ;;  %v1891_v51 = vld [vmem:[#allocation5 + $0xb4] sm:$0xf0]  ;;  %v1446_v52 = vld [vmem:[#allocation5 + $0x130] sm:$0xf]  ;;  %v1310_v59 = vld [vmem:[#allocation5 + $0x20] sm:$0xf] }
  0x21   :  { %909 = vmatpush.bf16.msra.mxu2 %v1463_v34  ;;  %v1907_v53 = vld [vmem:[#allocation5 + $0x134] sm:$0xf0]  ;;  %v1510_v54 = vld [vmem:[#allocation5 + $0x1b0] sm:$0xf]  ;;  %v1383_v57 = vor.u32 %v1891_v51, %v1382_v49  ;;  %v1873_v60 = vld [vmem:[#allocation5 + $0x24] sm:$0xf0] }
  0x22   :  { %922 = vmatpush.bf16.msra.mxu3 %v1527_v38  ;;  %v1923_v55 = vld [vmem:[#allocation5 + $0x1b4] sm:$0xf0]  ;;  %v1447_v58 = vor.u32 %v1907_v53, %v1446_v52  ;;  %v1374_v61 = vld [vmem:[#allocation5 + $0xa0] sm:$0xf]  ;;  %v1889_v63 = vld [vmem:[#allocation5 + $0xa4] sm:$0xf0]  ;;  %v1311_v4 = vor.u32 %v1873_v60, %v1310_v59 }
  0x23   :  { %884 = vmatpush.bf16.msra.mxu0 %v1327_v44  ;;  %v1511_v62 = vor.u32 %v1923_v55, %v1510_v54  ;;  %v1438_v0 = vld [vmem:[#allocation5 + $0x120] sm:$0xf]  ;;  %v1905_v1 = vld [vmem:[#allocation5 + $0x124] sm:$0xf0]  ;;  %v1375_v5 = vor.u32 %v1889_v63, %v1374_v61  ;;  %v1302_v7 = vld [vmem:[#allocation5 + $0x10] sm:$0xf] }
  0x24   :  { %897 = vmatpush.bf16.msra.mxu1 %v1391_v45  ;;  %v1502_v2 = vld [vmem:[#allocation5 + $0x1a0] sm:$0xf]  ;;  %v1921_v3 = vld [vmem:[#allocation5 + $0x1a4] sm:$0xf0]  ;;  %v1439_v6 = vor.u32 %v1905_v1, %v1438_v0  ;;  %v1871_v8 = vld [vmem:[#allocation5 + $0x14] sm:$0xf0] }
  0x25   :  { %910 = vmatpush.bf16.msra.mxu2 %v1455_v46  ;;  %v1366_v9 = vld [vmem:[#allocation5 + $0x90] sm:$0xf]  ;;  %v1503_v10 = vor.u32 %v1921_v3, %v1502_v2  ;;  %v1887_v11 = vld [vmem:[#allocation5 + $0x94] sm:$0xf0]  ;;  %v1303_v16 = vor.u32 %v1871_v8, %v1302_v7  ;;  %v1294_v17 = vld [vmem:[#allocation5] sm:$0xf] }
  0x26   :  { %923 = vmatpush.bf16.msra.mxu3 %v1519_v50  ;;  %v1430_v12 = vld [vmem:[#allocation5 + $0x110] sm:$0xf]  ;;  %v1903_v13 = vld [vmem:[#allocation5 + $0x114] sm:$0xf0]  ;;  %v1869_v18 = vld [vmem:[#allocation5 + $0x4] sm:$0xf0]  ;;  %v1367_v19 = vor.u32 %v1887_v11, %v1366_v9 }
  0x27   :  { %885 = vmatpush.bf16.msra.mxu0 %v1319_v56  ;;  %v1494_v14 = vld [vmem:[#allocation5 + $0x190] sm:$0xf]  ;;  %v1919_v15 = vld [vmem:[#allocation5 + $0x194] sm:$0xf0]  ;;  %v1431_v20 = vor.u32 %v1903_v13, %v1430_v12  ;;  %v1358_v21 = vld [vmem:[#allocation5 + $0x80] sm:$0xf]  ;;  %v1295_v31 = vor.u32 %v1869_v18, %v1294_v17 }
  0x28   :  { %898 = vmatpush.bf16.msra.mxu1 %v1383_v57  ;;  %v1885_v22 = vld [vmem:[#allocation5 + $0x84] sm:$0xf0]  ;;  %v1422_v23 = vld [vmem:[#allocation5 + $0x100] sm:$0xf]  ;;  %v1495_v24 = vor.u32 %v1919_v15, %v1494_v14  ;;  %v1606_v28 = vld [vmem:[#allocation5 + $0x270] sm:$0xf] }
  0x29   :  { %911 = vmatpush.bf16.msra.mxu2 %v1447_v58  ;;  %v1901_v25 = vld [vmem:[#allocation5 + $0x104] sm:$0xf0]  ;;  %v1486_v26 = vld [vmem:[#allocation5 + $0x180] sm:$0xf]  ;;  %v1947_v29 = vld [vmem:[#allocation5 + $0x274] sm:$0xf0]  ;;  %v1359_v35 = vor.u32 %v1885_v22, %v1358_v21 }
  0x2a   :  { %924 = vmatpush.bf16.msra.mxu3 %v1511_v62  ;;  %v1917_v27 = vld [vmem:[#allocation5 + $0x184] sm:$0xf0]  ;;  %v1670_v30 = vld [vmem:[#allocation5 + $0x2f0] sm:$0xf]  ;;  %v1963_v32 = vld [vmem:[#allocation5 + $0x2f4] sm:$0xf0]  ;;  %v1423_v36 = vor.u32 %v1901_v25, %v1422_v23  ;;  %v1607_v40 = vor.u32 %v1947_v29, %v1606_v28 }
  0x2b   :  { %886 = vmatpush.bf16.msra.mxu0 %v1311_v4  ;;  %v1734_v33 = vld [vmem:[#allocation5 + $0x370] sm:$0xf]  ;;  %v1979_v34 = vld [vmem:[#allocation5 + $0x374] sm:$0xf0]  ;;  %v1487_v39 = vor.u32 %v1917_v27, %v1486_v26  ;;  %v1671_v41 = vor.u32 %v1963_v32, %v1670_v30  ;;  %v1598_v43 = vld [vmem:[#allocation5 + $0x260] sm:$0xf] }
  0x2c   :  { %899 = vmatpush.bf16.msra.mxu1 %v1375_v5  ;;  %v1798_v37 = vld [vmem:[#allocation5 + $0x3f0] sm:$0xf]  ;;  %v1995_v38 = vld [vmem:[#allocation5 + $0x3f4] sm:$0xf0]  ;;  %v1735_v42 = vor.u32 %v1979_v34, %v1734_v33  ;;  %v1945_v44 = vld [vmem:[#allocation5 + $0x264] sm:$0xf0] }
  0x2d   :  { %912 = vmatpush.bf16.msra.mxu2 %v1439_v6  ;;  %v1662_v45 = vld [vmem:[#allocation5 + $0x2e0] sm:$0xf]  ;;  %v1799_v46 = vor.u32 %v1995_v38, %v1798_v37  ;;  %v1961_v47 = vld [vmem:[#allocation5 + $0x2e4] sm:$0xf0]  ;;  %v93_v52 = vld [vmem:[#allocation2 + $0x10] sm:$0xff]  ;;  %v1599_v53 = vor.u32 %v1945_v44, %v1598_v43  ;;  %s2162_s9 = smov [#allocation10]  }
  0x2e   :  { %925 = vmatpush.bf16.msra.mxu3 %v1503_v10  ;;  %v1726_v48 = vld [vmem:[#allocation5 + $0x360] sm:$0xf]  ;;  %v1977_v49 = vld [vmem:[#allocation5 + $0x364] sm:$0xf0]  ;;  %v1590_v54 = vld [vmem:[#allocation5 + $0x250] sm:$0xf]  ;;  %v2220_v57 = vpack.c.bf16 %v93_v52, %v93_v52  ;;  %v1663_v58 = vor.u32 %v1961_v47, %v1662_v45 }
  0x2f   :  { %887 = vmatpush.bf16.msra.mxu0 %v1303_v16  ;;  %v1790_v50 = vld [vmem:[#allocation5 + $0x3e0] sm:$0xf]  ;;  %v1993_v51 = vld [vmem:[#allocation5 + $0x3e4] sm:$0xf0]  ;;  %v1943_v55 = vld [vmem:[#allocation5 + $0x254] sm:$0xf0]  ;;  %v1727_v59 = vor.u32 %v1977_v49, %v1726_v48 }
  0x30   :  { %900 = vmatpush.bf16.msra.mxu1 %v1367_v19  ;;  %v1654_v56 = vld [vmem:[#allocation5 + $0x2d0] sm:$0xf]  ;;  %v1959_v60 = vld [vmem:[#allocation5 + $0x2d4] sm:$0xf0]  ;;  %v1791_v63 = vor.u32 %v1993_v51, %v1790_v50  ;;  %v91_v0 = vld [vmem:[#allocation2] sm:$0xff]  ;;  %v1591_v8 = vor.u32 %v1943_v55, %v1590_v54  ;;  %s1278_s10 = sshll.u32 %s2162_s9, 4  ;;  %s1279_s10 = int_to_ptr.vmem [resolvable:$true] %s1278_s10 }
  0x31   :  { %913 = vmatpush.bf16.msra.mxu2 %v1431_v20  ;;  %v1718_v61 = vld [vmem:[#allocation5 + $0x350] sm:$0xf]  ;;  %v1975_v62 = vld [vmem:[#allocation5 + $0x354] sm:$0xf0]  ;;  %v92_v2 = vld [vmem:[#allocation2 + $0x8] sm:$0xff]  ;;  %v2223_v5 = vpack.c.bf16 %v91_v0, %v91_v0  ;;  %v1655_v9 = vor.u32 %v1959_v60, %v1654_v56  ;;  %s1280_s13 = sshll.u32 %s2279_s8, 4  ;;  %s1281_s13 = int_to_ptr.hbm [resolvable:$true] %s1280_s13 }
  0x32   :  { %926 = vmatpush.bf16.msra.mxu3 %v1495_v24  ;;  %v94_v1 = vld [vmem:[#allocation2 + $0x18] sm:$0xff]  ;;  %v1782_v3 = vld [vmem:[#allocation5 + $0x3d0] sm:$0xf]  ;;  %v2227_v7 = vpack.c.bf16 %v92_v2, %v92_v2  ;;  %v1719_v10 = vor.u32 %v1975_v62, %v1718_v61  ;;  %v1582_v11 = vld [vmem:[#allocation5 + $0x240] sm:$0xf] }
  0x33   :  { %888 = vmatpush.bf16.msra.mxu0 %v1295_v31  ;;  %v1991_v4 = vld [vmem:[#allocation5 + $0x3d4] sm:$0xf0]  ;;  %v2225_v6 = vpack.c.bf16 %v94_v1, %v94_v1  ;;  %v1941_v12 = vld [vmem:[#allocation5 + $0x244] sm:$0xf0]  ;;  %v1646_v13 = vld [vmem:[#allocation5 + $0x2c0] sm:$0xf] }
  0x34   :  { %901 = vmatpush.bf16.msra.mxu1 %v1359_v35  ;;  %v1783_v14 = vor.u32 %v1991_v4, %v1782_v3  ;;  %v1957_v15 = vld [vmem:[#allocation5 + $0x2c4] sm:$0xf0]  ;;  %v1710_v16 = vld [vmem:[#allocation5 + $0x340] sm:$0xf]  ;;  %v1583_v20 = vor.u32 %v1941_v12, %v1582_v11  ;;  %v1574_v23 = vld [vmem:[#allocation5 + $0x230] sm:$0xf] }
  0x35   :  { %914 = vmatpush.bf16.msra.mxu2 %v1423_v36  ;;  %v1973_v17 = vld [vmem:[#allocation5 + $0x344] sm:$0xf0]  ;;  %v1774_v18 = vld [vmem:[#allocation5 + $0x3c0] sm:$0xf]  ;;  %v1647_v21 = vor.u32 %v1957_v15, %v1646_v13  ;;  %v1939_v24 = vld [vmem:[#allocation5 + $0x234] sm:$0xf0] }
  0x36   :  { %927 = vmatpush.bf16.msra.mxu3 %v1487_v39  ;;  %889 = vmatmul.bf16.vlgmr.msra.gmra.mxu0 %v2223_v5  ;;  %v1989_v19 = vld [vmem:[#allocation5 + $0x3c4] sm:$0xf0]  ;;  %v1711_v22 = vor.u32 %v1973_v17, %v1710_v16  ;;  %v1638_v25 = vld [vmem:[#allocation5 + $0x2b0] sm:$0xf]  ;;  %v1955_v27 = vld [vmem:[#allocation5 + $0x2b4] sm:$0xf0]  ;;  %v1575_v32 = vor.u32 %v1939_v24, %v1574_v23 }
  0x37   :  { %933 = vmatpush.bf16.msrb.mxu0 %v1607_v40  ;;  %902 = vmatmul.bf16.vlgmr.msra.gmra.mxu1 %v2227_v7  ;;  %v1775_v26 = vor.u32 %v1989_v19, %v1774_v18  ;;  %v1702_v28 = vld [vmem:[#allocation5 + $0x330] sm:$0xf]  ;;  %v1971_v29 = vld [vmem:[#allocation5 + $0x334] sm:$0xf0]  ;;  %v1639_v33 = vor.u32 %v1955_v27, %v1638_v25  ;;  %v1566_v35 = vld [vmem:[#allocation5 + $0x220] sm:$0xf] }
  0x38   :  { %946 = vmatpush.bf16.msrb.mxu1 %v1671_v41  ;;  %915 = vmatmul.bf16.vlgmr.msra.gmra.mxu2 %v2220_v57  ;;  %v1766_v30 = vld [vmem:[#allocation5 + $0x3b0] sm:$0xf]  ;;  %v1987_v31 = vld [vmem:[#allocation5 + $0x3b4] sm:$0xf0]  ;;  %v1703_v34 = vor.u32 %v1971_v29, %v1702_v28  ;;  %v1937_v36 = vld [vmem:[#allocation5 + $0x224] sm:$0xf0] }
  0x39   :  { %959 = vmatpush.bf16.msrb.mxu2 %v1735_v42  ;;  %928 = vmatmul.bf16.vlgmr.msra.gmra.mxu3 %v2225_v6  ;;  %v1630_v37 = vld [vmem:[#allocation5 + $0x2a0] sm:$0xf]  ;;  %v1767_v38 = vor.u32 %v1987_v31, %v1766_v30  ;;  %v1953_v39 = vld [vmem:[#allocation5 + $0x2a4] sm:$0xf0]  ;;  %v1567_v44 = vor.u32 %v1937_v36, %v1566_v35  ;;  %v1558_v47 = vld [vmem:[#allocation5 + $0x210] sm:$0xf] }
  0x3a   :  { %972 = vmatpush.bf16.msrb.mxu3 %v1799_v46  ;;  %v1694_v40 = vld [vmem:[#allocation5 + $0x320] sm:$0xf]  ;;  %v1969_v41 = vld [vmem:[#allocation5 + $0x324] sm:$0xf0]  ;;  %v1631_v45 = vor.u32 %v1953_v39, %v1630_v37  ;;  %v1935_v48 = vld [vmem:[#allocation5 + $0x214] sm:$0xf0] }
  0x3b   :  { %934 = vmatpush.bf16.msrb.mxu0 %v1599_v53  ;;  %v1758_v42 = vld [vmem:[#allocation5 + $0x3a0] sm:$0xf]  ;;  %v1985_v43 = vld [vmem:[#allocation5 + $0x3a4] sm:$0xf0]  ;;  %v1695_v46 = vor.u32 %v1969_v41, %v1694_v40  ;;  %v1622_v49 = vld [vmem:[#allocation5 + $0x290] sm:$0xf]  ;;  %v1559_v56 = vor.u32 %v1935_v48, %v1558_v47 }
  0x3c   :  { %947 = vmatpush.bf16.msrb.mxu1 %v1663_v58  ;;  %v1759_v50 = vor.u32 %v1985_v43, %v1758_v42  ;;  %v1951_v51 = vld [vmem:[#allocation5 + $0x294] sm:$0xf0]  ;;  %v1686_v52 = vld [vmem:[#allocation5 + $0x310] sm:$0xf]  ;;  %v1550_v58 = vld [vmem:[#allocation5 + $0x200] sm:$0xf] }
  0x3d   :  { %960 = vmatpush.bf16.msrb.mxu2 %v1727_v59  ;;  %v1967_v53 = vld [vmem:[#allocation5 + $0x314] sm:$0xf0]  ;;  %v1750_v54 = vld [vmem:[#allocation5 + $0x390] sm:$0xf]  ;;  %v1933_v59 = vld [vmem:[#allocation5 + $0x204] sm:$0xf0]  ;;  %v1623_v60 = vor.u32 %v1951_v51, %v1622_v49 }
  0x3e   :  { %973 = vmatpush.bf16.msrb.mxu3 %v1791_v63  ;;  %v1983_v55 = vld [vmem:[#allocation5 + $0x394] sm:$0xf0]  ;;  %v1687_v61 = vor.u32 %v1967_v53, %v1686_v52  ;;  %v1614_v62 = vld [vmem:[#allocation5 + $0x280] sm:$0xf]  ;;  %v1949_v63 = vld [vmem:[#allocation5 + $0x284] sm:$0xf0]  ;;  %v1551_v11 = vor.u32 %v1933_v59, %v1550_v58 }
  0x3f   :  { %935 = vmatpush.bf16.msrb.mxu0 %v1591_v8  ;;  %v1678_v0 = vld [vmem:[#allocation5 + $0x300] sm:$0xf]  ;;  %v1751_v1 = vor.u32 %v1983_v55, %v1750_v54  ;;  %v1965_v2 = vld [vmem:[#allocation5 + $0x304] sm:$0xf0]  ;;  %v1882_v8 = vld [vmem:[#allocation5 + $0x74] sm:$0xf]  ;;  %v1615_v15 = vor.u32 %v1949_v63, %v1614_v62 }
  0x40   :  { %948 = vmatpush.bf16.msrb.mxu1 %v1655_v9  ;;  %v1742_v3 = vld [vmem:[#allocation5 + $0x380] sm:$0xf]  ;;  %v1981_v4 = vld [vmem:[#allocation5 + $0x384] sm:$0xf0]  ;;  %v1352_v9 = vld [vmem:[#allocation5 + $0x78] sm:$0xf0]  ;;  %v1679_v16 = vor.u32 %v1965_v2, %v1678_v0 }
  0x41   :  { %961 = vmatpush.bf16.msrb.mxu2 %v1719_v10  ;;  %v1898_v10 = vld [vmem:[#allocation5 + $0xf4] sm:$0xf]  ;;  %v1416_v12 = vld [vmem:[#allocation5 + $0xf8] sm:$0xf0]  ;;  %v1880_v24 = vld [vmem:[#allocation5 + $0x64] sm:$0xf] }
  0x42   :  { %974 = vmatpush.bf16.msrb.mxu3 %v1783_v14  ;;  %v1914_v13 = vld [vmem:[#allocation5 + $0x174] sm:$0xf]  ;;  %v1480_v14 = vld [vmem:[#allocation5 + $0x178] sm:$0xf0]  ;;  %v1419_v25 = vor.u32 %v1898_v10, %v1416_v12  ;;  %v1344_v27 = vld [vmem:[#allocation5 + $0x68] sm:$0xf0] }
  0x43   :  { %936 = vmatpush.bf16.msrb.mxu0 %v1583_v20  ;;  %v1930_v17 = vld [vmem:[#allocation5 + $0x1f4] sm:$0xf]  ;;  %v1544_v18 = vld [vmem:[#allocation5 + $0x1f8] sm:$0xf0]  ;;  %v1743_v20 = vor.u32 %v1981_v4, %v1742_v3  ;;  %v1896_v28 = vld [vmem:[#allocation5 + $0xe4] sm:$0xf]  ;;  %v1347_v39 = vor.u32 %v1880_v24, %v1344_v27 }
  0x44   :  { %949 = vmatpush.bf16.msrb.mxu1 %v1647_v21  ;;  %v97_v19 = vld [vmem:[#allocation2 + $0x30] sm:$0xff]  ;;  %v1355_v21 = vor.u32 %v1882_v8, %v1352_v9  ;;  %v98_v23 = vld [vmem:[#allocation2 + $0x38] sm:$0xff]  ;;  %v96_v29 = vld [vmem:[#allocation2 + $0x28] sm:$0xff]  ;;  %v1547_v30 = vor.u32 %v1930_v17, %v1544_v18 }
  0x45   :  { %962 = vmatpush.bf16.msrb.mxu2 %v1711_v22  ;;  %v95_v22 = vld [vmem:[#allocation2 + $0x20] sm:$0xff]  ;;  %v2232_v31 = vpack.c.bf16 %v97_v19, %v97_v19  ;;  %v2236_v36 = vpack.c.bf16 %v98_v23, %v98_v23  ;;  %v2238_v40 = vpack.c.bf16 %v96_v29, %v96_v29  ;;  %v1400_v48 = vld [vmem:[#allocation5 + $0xd8] sm:$0xf0]  ;;  %v1910_v49 = vld [vmem:[#allocation5 + $0x154] sm:$0xf] }
  0x46   :  { %975 = vmatpush.bf16.msrb.mxu3 %v1775_v26  ;;  %v1483_v26 = vor.u32 %v1914_v13, %v1480_v14  ;;  %v2234_v35 = vpack.c.bf16 %v95_v22, %v95_v22  ;;  %v1928_v37 = vld [vmem:[#allocation5 + $0x1e4] sm:$0xf]  ;;  %v1926_v51 = vld [vmem:[#allocation5 + $0x1d4] sm:$0xf]  ;;  %v1528_v52 = vld [vmem:[#allocation5 + $0x1d8] sm:$0xf0] }
  0x47   :  { %937 = vmatpush.bf16.msrb.mxu0 %v1575_v32  ;;  %v1408_v32 = vld [vmem:[#allocation5 + $0xe8] sm:$0xf0]  ;;  %v2243_v41 = vld [vmem:[%s2272_s1] sm:$0xff]  ;;  %v1874_v10 = vld [vmem:[#allocation5 + $0x34] sm:$0xf] }
  0x48   :  { %950 = vmatpush.bf16.msrb.mxu1 %v1639_v33  ;;  %v1912_v33 = vld [vmem:[#allocation5 + $0x164] sm:$0xf]  ;;  %v1411_v42 = vor.u32 %v1896_v28, %v1408_v32  ;;  %v1092_v53 = vsub.f32 1.0, %v2243_v41  ;;  %v1328_v59 = vld [vmem:[#allocation5 + $0x48] sm:$0xf0] }
  0x49   :  { %963 = vmatpush.bf16.msrb.mxu2 %v1703_v34  ;;  %v1472_v34 = vld [vmem:[#allocation5 + $0x168] sm:$0xf0]  ;;  %v1876_v58 = vld [vmem:[#allocation5 + $0x44] sm:$0xf]  ;;  %v1890_v12 = vld [vmem:[#allocation5 + $0xb4] sm:$0xf] }
  0x4a   :  { %976 = vmatpush.bf16.msrb.mxu3 %v1767_v38  ;;  %v1536_v38 = vld [vmem:[#allocation5 + $0x1e8] sm:$0xf0]  ;;  %v1475_v43 = vor.u32 %v1912_v33, %v1472_v34  ;;  %v1908_v63 = vld [vmem:[#allocation5 + $0x144] sm:$0xf]  ;;  %v1331_v4 = vor.u32 %v1876_v58, %v1328_v59  ;;  %v1384_v14 = vld [vmem:[#allocation5 + $0xb8] sm:$0xf0] }
  0x4b   :  { %938 = vmatpush.bf16.msrb.mxu0 %v1567_v44  ;;  %v1878_v44 = vld [vmem:[#allocation5 + $0x54] sm:$0xf]  ;;  %v1539_v47 = vor.u32 %v1928_v37, %v1536_v38  ;;  %v1392_v62 = vld [vmem:[#allocation5 + $0xc8] sm:$0xf0]  ;;  %v1924_v2 = vld [vmem:[#allocation5 + $0x1c4] sm:$0xf] }
  0x4c   :  { %951 = vmatpush.bf16.msrb.mxu1 %v1631_v45  ;;  %v1336_v45 = vld [vmem:[#allocation5 + $0x58] sm:$0xf0]  ;;  %v1456_v0 = vld [vmem:[#allocation5 + $0x148] sm:$0xf0]  ;;  %v1922_v17 = vld [vmem:[#allocation5 + $0x1b4] sm:$0xf] }
  0x4d   :  { %964 = vmatpush.bf16.msrb.mxu2 %v1695_v46  ;;  %v1894_v46 = vld [vmem:[#allocation5 + $0xd4] sm:$0xf]  ;;  %v1339_v54 = vor.u32 %v1878_v44, %v1336_v45  ;;  %v1520_v3 = vld [vmem:[#allocation5 + $0x1c8] sm:$0xf0]  ;;  %v1459_v9 = vor.u32 %v1908_v63, %v1456_v0  ;;  %v1512_v18 = vld [vmem:[#allocation5 + $0x1b8] sm:$0xf0] }
  0x4e   :  { %977 = vmatpush.bf16.msrb.mxu3 %v1759_v50  ;;  %v1464_v50 = vld [vmem:[#allocation5 + $0x158] sm:$0xf0]  ;;  %v1403_v55 = vor.u32 %v1894_v46, %v1400_v48  ;;  %v1523_v13 = vor.u32 %v1924_v2, %v1520_v3  ;;  %v1872_v22 = vld [vmem:[#allocation5 + $0x24] sm:$0xf]  ;;  %v1312_v23 = vld [vmem:[#allocation5 + $0x28] sm:$0xf0] }
  0x4f   :  { %939 = vmatpush.bf16.msrb.mxu0 %v1559_v56  ;;  %v1467_v56 = vor.u32 %v1910_v49, %v1464_v50  ;;  %v1888_v24 = vld [vmem:[#allocation5 + $0xa4] sm:$0xf]  ;;  %v1440_v28 = vld [vmem:[#allocation5 + $0x128] sm:$0xf0]  ;;  %v1315_v32 = vor.u32 %v1872_v22, %v1312_v23  ;;  %v1870_v37 = vld [vmem:[#allocation5 + $0x14] sm:$0xf] }
  0x50   :  { %952 = vmatpush.bf16.msrb.mxu1 %v1623_v60  ;;  %v1892_v60 = vld [vmem:[#allocation5 + $0xc4] sm:$0xf]  ;;  %v1304_v38 = vld [vmem:[#allocation5 + $0x18] sm:$0xf0]  ;;  %v1902_v44 = vld [vmem:[#allocation5 + $0x114] sm:$0xf] }
  0x51   :  { %965 = vmatpush.bf16.msrb.mxu2 %v1687_v61  ;;  %v1531_v61 = vor.u32 %v1926_v51, %v1528_v52  ;;  %v1395_v8 = vor.u32 %v1892_v60, %v1392_v62  ;;  %v1904_v27 = vld [vmem:[#allocation5 + $0x124] sm:$0xf]  ;;  %v1432_v45 = vld [vmem:[#allocation5 + $0x118] sm:$0xf0]  ;;  %v1918_v46 = vld [vmem:[#allocation5 + $0x194] sm:$0xf]  ;;  %v1307_v49 = vor.u32 %v1870_v37, %v1304_v38 }
  0x52   :  { %978 = vmatpush.bf16.msrb.mxu3 %v1751_v1  ;;  %v2161_v1 = vmov 0   ;;  %v1920_v29 = vld [vmem:[#allocation5 + $0x1a4] sm:$0xf]  ;;  %v1443_v34 = vor.u32 %v1904_v27, %v1440_v28  ;;  %v1360_v51 = vld [vmem:[#allocation5 + $0x88] sm:$0xf0] }
  0x53   :  { %940 = vmatpush.bf16.msrb.mxu0 %v1551_v11  ;;  %2022 = vset.pattern.permute.xlu0 %v2161_v1  ;;  %v1320_v11 = vld [vmem:[#allocation5 + $0x38] sm:$0xf0]  ;;  %v1868_v48 = vld [vmem:[#allocation5 + $0x4] sm:$0xf]  ;;  %v1488_v59 = vld [vmem:[#allocation5 + $0x188] sm:$0xf0] }
  0x54   :  { %953 = vmatpush.bf16.msrb.mxu1 %v1615_v15  ;;  %1095 = vperm.xlu0 %2022, %v1092_v53   ;;  %v1906_v15 = vld [vmem:[#allocation5 + $0x134] sm:$0xf]  ;;  %v1323_v19 = vor.u32 %v1874_v10, %v1320_v11  ;;  %v1884_v50 = vld [vmem:[#allocation5 + $0x84] sm:$0xf]  ;;  %v1435_v53 = vor.u32 %v1902_v44, %v1432_v45  ;;  %v1672_v0 = vld [vmem:[#allocation5 + $0x2f8] sm:$0xf0] }
  0x55   :  { %966 = vmatpush.bf16.msrb.mxu2 %v1679_v16  ;;  %v1448_v16 = vld [vmem:[#allocation5 + $0x138] sm:$0xf0]  ;;  %v1946_v60 = vld [vmem:[#allocation5 + $0x274] sm:$0xf]  ;;  %v1363_v3 = vor.u32 %v1884_v50, %v1360_v51  ;;  %v1792_v22 = vld [vmem:[#allocation5 + $0x3e8] sm:$0xf0] }
  0x56   :  { %979 = vmatpush.bf16.msrb.mxu3 %v1743_v20  ;;  %941 = vmatmul.bf16.vlgmr.msrb.gmra.mxu0 %v2234_v35  ;;  %v1387_v20 = vor.u32 %v1890_v12, %v1384_v14  ;;  %v1962_v62 = vld [vmem:[#allocation5 + $0x2f4] sm:$0xf]  ;;  %v1736_v2 = vld [vmem:[#allocation5 + $0x378] sm:$0xf0]  ;;  %v1944_v14 = vld [vmem:[#allocation5 + $0x264] sm:$0xf] }
  0x57   :  { %985 = vmatpush.bf16.msra.mxu0 %v1355_v21  ;;  %954 = vmatmul.bf16.vlgmr.msrb.gmra.mxu1 %v2238_v40  ;;  %v1451_v21 = vor.u32 %v1906_v15, %v1448_v16  ;;  %v1978_v1 = vld [vmem:[#allocation5 + $0x374] sm:$0xf]  ;;  %v1675_v12 = vor.u32 %v1962_v62, %v1672_v0  ;;  %v1600_v15 = vld [vmem:[#allocation5 + $0x268] sm:$0xf0]  ;;  %v1960_v16 = vld [vmem:[#allocation5 + $0x2e4] sm:$0xf] }
  0x58   :  { %998 = vmatpush.bf16.msra.mxu1 %v1419_v25  ;;  %967 = vmatmul.bf16.vlgmr.msrb.gmra.mxu2 %v2232_v31  ;;  %v1515_v25 = vor.u32 %v1922_v17, %v1512_v18  ;;  %v1664_v18 = vld [vmem:[#allocation5 + $0x2e8] sm:$0xf0]  ;;  %v1603_v23 = vor.u32 %v1944_v14, %v1600_v15  ;;  %v1592_v27 = vld [vmem:[#allocation5 + $0x258] sm:$0xf0]  ;;  %v1958_v28 = vld [vmem:[#allocation5 + $0x2d4] sm:$0xf] }
  0x59   :  { %1011 = vmatpush.bf16.msra.mxu2 %v1483_v26  ;;  %980 = vmatmul.bf16.vlgmr.msrb.gmra.mxu3 %v2236_v36  ;;  %v1376_v26 = vld [vmem:[#allocation5 + $0xa8] sm:$0xf0]  ;;  %v1784_v37 = vld [vmem:[#allocation5 + $0x3d8] sm:$0xf0]  ;;  %v1938_v50 = vld [vmem:[#allocation5 + $0x234] sm:$0xf] }
  0x5a   :  { %1024 = vmatpush.bf16.msra.mxu3 %v1547_v30  ;;  %v1504_v30 = vld [vmem:[#allocation5 + $0x1a8] sm:$0xf0]  ;;  %v1379_v33 = vor.u32 %v1888_v24, %v1376_v26  ;;  %v1667_v24 = vor.u32 %v1960_v16, %v1664_v18  ;;  %v1942_v26 = vld [vmem:[#allocation5 + $0x254] sm:$0xf]  ;;  %v1576_v51 = vld [vmem:[#allocation5 + $0x238] sm:$0xf0] }
  0x5b   :  { %986 = vmatpush.bf16.msra.mxu0 %v1347_v39  ;;  %v1886_v39 = vld [vmem:[#allocation5 + $0x94] sm:$0xf]  ;;  %v1595_v38 = vor.u32 %v1942_v26, %v1592_v27  ;;  %v1584_v44 = vld [vmem:[#allocation5 + $0x248] sm:$0xf0]  ;;  %v1560_v15 = vld [vmem:[#allocation5 + $0x218] sm:$0xf0] }
  0x5c   :  { %999 = vmatpush.bf16.msra.mxu1 %v1411_v42  ;;  %1102 = vperm.xlu0 %2022, %v2243_v41   ;;  %v1507_v42 = vor.u32 %v1920_v29, %v1504_v30  ;;  %v1296_v41 = vld [vmem:[#allocation5 + $0x8] sm:$0xf0]  ;;  %v1656_v30 = vld [vmem:[#allocation5 + $0x2d8] sm:$0xf0]  ;;  %v1934_v14 = vld [vmem:[#allocation5 + $0x214] sm:$0xf] }
  0x5d   :  { %1012 = vmatpush.bf16.msra.mxu2 %v1475_v43  ;;  %v1368_v43 = vld [vmem:[#allocation5 + $0x98] sm:$0xf0]  ;;  %v1299_v63 = vor.u32 %v1868_v48, %v1296_v41  ;;  %v1712_v48 = vld [vmem:[#allocation5 + $0x348] sm:$0xf0]  ;;  %v1950_v16 = vld [vmem:[#allocation5 + $0x294] sm:$0xf] }
  0x5e   :  { %1025 = vmatpush.bf16.msra.mxu3 %v1539_v47  ;;  %v1496_v47 = vld [vmem:[#allocation5 + $0x198] sm:$0xf0]  ;;  %v1371_v52 = vor.u32 %v1886_v39, %v1368_v43  ;;  %v1659_v39 = vor.u32 %v1958_v28, %v1656_v30  ;;  %v1940_v43 = vld [vmem:[#allocation5 + $0x244] sm:$0xf]  ;;  %v1568_v0 = vld [vmem:[#allocation5 + $0x228] sm:$0xf0] }
  0x5f   :  { %987 = vmatpush.bf16.msra.mxu0 %v1339_v54  ;;  %v1900_v54 = vld [vmem:[#allocation5 + $0x104] sm:$0xf]  ;;  %v1499_v58 = vor.u32 %v1918_v46, %v1496_v47  ;;  %v1648_v46 = vld [vmem:[#allocation5 + $0x2c8] sm:$0xf0]  ;;  %v1624_v18 = vld [vmem:[#allocation5 + $0x298] sm:$0xf0] }
  0x60   :  { %1000 = vmatpush.bf16.msra.mxu1 %v1403_v55  ;;  %v1424_v55 = vld [vmem:[#allocation5 + $0x108] sm:$0xf0]  ;;  %v1972_v47 = vld [vmem:[#allocation5 + $0x344] sm:$0xf] }
  0x61   :  { %1013 = vmatpush.bf16.msra.mxu2 %v1467_v56  ;;  %v1916_v56 = vld [vmem:[#allocation5 + $0x184] sm:$0xf]  ;;  %v1552_v27 = vld [vmem:[#allocation5 + $0x208] sm:$0xf0] }
  0x62   :  { %1026 = vmatpush.bf16.msra.mxu3 %v1531_v61  ;;  %v1608_v61 = vld [vmem:[#allocation5 + $0x278] sm:$0xf0]  ;;  %v1491_v10 = vor.u32 %v1916_v56, %v1488_v59  ;;  %v1932_v26 = vld [vmem:[#allocation5 + $0x204] sm:$0xf]  ;;  %v1616_v30 = vld [vmem:[#allocation5 + $0x288] sm:$0xf0] }
  0x63   :  { %988 = vmatpush.bf16.msra.mxu0 %v1331_v4  ;;  %v1427_v4 = vor.u32 %v1900_v54, %v1424_v55  ;;  %v1611_v11 = vor.u32 %v1946_v60, %v1608_v61  ;;  %v1640_v54 = vld [vmem:[#allocation5 + $0x2b8] sm:$0xf0]  ;;  %v1970_v55 = vld [vmem:[#allocation5 + $0x334] sm:$0xf]  ;;  %v1579_v60 = vor.u32 %v1938_v50, %v1576_v51  ;;  %v1948_v28 = vld [vmem:[#allocation5 + $0x284] sm:$0xf] }
  0x64   :  { %1001 = vmatpush.bf16.msra.mxu1 %v1395_v8  ;;  %v1994_v8 = vld [vmem:[#allocation5 + $0x3f4] sm:$0xf]  ;;  %v1704_v56 = vld [vmem:[#allocation5 + $0x338] sm:$0xf0]  ;;  %v1996_v50 = vld [vmem:[#allocation7] sm:$0xff] }
  0x65   :  { %1014 = vmatpush.bf16.msra.mxu2 %v1459_v9  ;;  %v1800_v9 = vld [vmem:[#allocation5 + $0x3f8] sm:$0xf0]  ;;  %v1707_v62 = vor.u32 %v1970_v55, %v1704_v56 }
  0x66   :  { %1027 = vmatpush.bf16.msra.mxu3 %v1523_v13  ;;  %v1739_v13 = vor.u32 %v1978_v1, %v1736_v2  ;;  %v1803_v17 = vor.u32 %v1994_v8, %v1800_v9  ;;  %v1768_v59 = vld [vmem:[#allocation5 + $0x3b8] sm:$0xf0]  ;;  %v1952_v1 = vld [vmem:[#allocation5 + $0x2a4] sm:$0xf]  ;;  %v1696_v8 = vld [vmem:[#allocation5 + $0x328] sm:$0xf0] }
  0x67   :  { %989 = vmatpush.bf16.msra.mxu0 %v1323_v19  ;;  %v1976_v19 = vld [vmem:[#allocation5 + $0x364] sm:$0xf] }
  0x68   :  { %1002 = vmatpush.bf16.msra.mxu1 %v1387_v20  ;;  %v1728_v20 = vld [vmem:[#allocation5 + $0x368] sm:$0xf0]  ;;  %v1984_v9 = vld [vmem:[#allocation5 + $0x3a4] sm:$0xf] }
  0x69   :  { %1015 = vmatpush.bf16.msra.mxu2 %v1451_v21  ;;  %v1992_v21 = vld [vmem:[#allocation5 + $0x3e4] sm:$0xf] }
  0x6a   :  { %1028 = vmatpush.bf16.msra.mxu3 %v1515_v25  ;;  %v1731_v25 = vor.u32 %v1976_v19, %v1728_v20  ;;  %v1795_v29 = vor.u32 %v1992_v21, %v1792_v22  ;;  %v1966_v19 = vld [vmem:[#allocation5 + $0x314] sm:$0xf]  ;;  %v1688_v20 = vld [vmem:[#allocation5 + $0x318] sm:$0xf0] }
  0x6b   :  { %990 = vmatpush.bf16.msra.mxu0 %v1315_v32  ;;  %v1974_v32 = vld [vmem:[#allocation5 + $0x354] sm:$0xf]  ;;  %v1752_v22 = vld [vmem:[#allocation5 + $0x398] sm:$0xf0] }
  0x6c   :  { %1003 = vmatpush.bf16.msra.mxu1 %v1379_v33  ;;  %v1720_v33 = vld [vmem:[#allocation5 + $0x358] sm:$0xf0]  ;;  %v1982_v21 = vld [vmem:[#allocation5 + $0x394] sm:$0xf] }
  0x6d   :  { %1016 = vmatpush.bf16.msra.mxu2 %v1443_v34  ;;  %v1990_v34 = vld [vmem:[#allocation5 + $0x3d4] sm:$0xf] }
  0x6e   :  { %1029 = vmatpush.bf16.msra.mxu3 %v1507_v42  ;;  %v1723_v42 = vor.u32 %v1974_v32, %v1720_v33  ;;  %v1787_v45 = vor.u32 %v1990_v34, %v1784_v37  ;;  %v1964_v32 = vld [vmem:[#allocation5 + $0x304] sm:$0xf]  ;;  %v1680_v33 = vld [vmem:[#allocation5 + $0x308] sm:$0xf0] }
  0x6f   :  { %991 = vmatpush.bf16.msra.mxu0 %v1307_v49  ;;  %v1988_v49 = vld [vmem:[#allocation5 + $0x3c4] sm:$0xf]  ;;  %v1744_v37 = vld [vmem:[#allocation5 + $0x388] sm:$0xf0] }
  0x70   :  { %1004 = vmatpush.bf16.msra.mxu1 %v1371_v52  ;;  %v1954_v52 = vld [vmem:[#allocation5 + $0x2b4] sm:$0xf]  ;;  %v1980_v34 = vld [vmem:[#allocation5 + $0x384] sm:$0xf] }
  0x71   :  { %1017 = vmatpush.bf16.msra.mxu2 %v1435_v53  ;;  %v1643_v61 = vor.u32 %v1954_v52, %v1640_v54 }
  0x72   :  { %1030 = vmatpush.bf16.msra.mxu3 %v1499_v58  ;;  %v1986_v58 = vld [vmem:[#allocation5 + $0x3b4] sm:$0xf] }
  0x73   :  { %992 = vmatpush.bf16.msra.mxu0 %v1299_v63  ;;  %v1936_v63 = vld [vmem:[#allocation5 + $0x224] sm:$0xf]  ;;  %v1771_v2 = vor.u32 %v1986_v58, %v1768_v59 }
  0x74   :  { %1005 = vmatpush.bf16.msra.mxu1 %v1363_v3  ;;  %v1632_v3 = vld [vmem:[#allocation5 + $0x2a8] sm:$0xf0] }
  0x75   :  { %1018 = vmatpush.bf16.msra.mxu2 %v1427_v4  ;;  %v1968_v4 = vld [vmem:[#allocation5 + $0x324] sm:$0xf] }
  0x76   :  { %1031 = vmatpush.bf16.msra.mxu3 %v1491_v10  ;;  %993 = vmatmul.bf16.vlgmr.msra.gmra.mxu0 %v2223_v5  ;;  %v1776_v5 = vld [vmem:[#allocation5 + $0x3c8] sm:$0xf0] }
  0x77   :  { %1037 = vmatpush.bf16.msrb.mxu0 %v1611_v11  ;;  %1006 = vmatmul.bf16.vlgmr.msra.gmra.mxu1 %v2227_v7  ;;  %v1715_v7 = vor.u32 %v1972_v47, %v1712_v48  ;;  %v1779_v53 = vor.u32 %v1988_v49, %v1776_v5  ;;  %v1760_v10 = vld [vmem:[#allocation5 + $0x3a8] sm:$0xf0]  ;;  %v1571_v11 = vor.u32 %v1936_v63, %v1568_v0  ;;  %v1999_v47 = vld [vmem:[#allocation7 + $0x18] sm:$0xff]  ;;  %v1998_v5 = vld [vmem:[#allocation7 + $0x10] sm:$0xff] }
  0x78   :  { %1050 = vmatpush.bf16.msrb.mxu1 %v1675_v12  ;;  %1019 = vmatmul.bf16.vlgmr.msra.gmra.mxu2 %v2220_v57  ;;  %v1956_v57 = vld [vmem:[#allocation5 + $0x2c4] sm:$0xf]  ;;  %v1635_v12 = vor.u32 %v1952_v1, %v1632_v3  ;;  %v2011_v1 = vld [vmem:[#allocation8 + $0x38] sm:$0xff] }
  0x79   :  { %1063 = vmatpush.bf16.msrb.mxu2 %v1739_v13  ;;  %1032 = vmatmul.bf16.vlgmr.msra.gmra.mxu3 %v2225_v6  ;;  %v1587_v6 = vor.u32 %v1940_v43, %v1584_v44  ;;  %v1651_v41 = vor.u32 %v1956_v57, %v1648_v46  ;;  %v1699_v13 = vor.u32 %v1968_v4, %v1696_v8  ;;  %v2003_v44 = vld [vmem:[#allocation7 + $0x38] sm:$0xff]  ;;  %v2002_v57 = vld [vmem:[#allocation7 + $0x30] sm:$0xff]  ;;  %v2000_v46 = vld [vmem:[#allocation7 + $0x20] sm:$0xff] }
  0x7a   :  { %1076 = vmatpush.bf16.msrb.mxu3 %v1803_v17  ;;  %v1763_v17 = vor.u32 %v1984_v9, %v1760_v10  ;;  %v1747_v43 = vor.u32 %v1980_v34, %v1744_v37  ;;  %v2010_v10 = vld [vmem:[#allocation8 + $0x30] sm:$0xff] }
  0x7b   :  { %1038 = vmatpush.bf16.msrb.mxu0 %v1603_v23  ;;  %v1563_v23 = vor.u32 %v1934_v14, %v1560_v15 }
  0x7c   :  { %1051 = vmatpush.bf16.msrb.mxu1 %v1667_v24  ;;  %v1627_v24 = vor.u32 %v1950_v16, %v1624_v18  ;;  %v2008_v16 = vld [vmem:[#allocation8 + $0x20] sm:$0xff] }
  0x7d   :  { %1064 = vmatpush.bf16.msrb.mxu2 %v1731_v25  ;;  %v1691_v25 = vor.u32 %v1966_v19, %v1688_v20  ;;  %v2006_v20 = vld [vmem:[#allocation8 + $0x10] sm:$0xff] }
  0x7e   :  { %1077 = vmatpush.bf16.msrb.mxu3 %v1795_v29  ;;  %v1755_v29 = vor.u32 %v1982_v21, %v1752_v22 }
  0x7f   :  { %1039 = vmatpush.bf16.msrb.mxu0 %v1595_v38  ;;  %v1555_v38 = vor.u32 %v1932_v26, %v1552_v27  ;;  %v2004_v26 = vld [vmem:[#allocation8] sm:$0xff] }
  0x80   :  { %1052 = vmatpush.bf16.msrb.mxu1 %v1659_v39  ;;  %v1619_v39 = vor.u32 %v1948_v28, %v1616_v30 }
  0x81   :  { %1065 = vmatpush.bf16.msrb.mxu2 %v1723_v42  ;;  %v1683_v42 = vor.u32 %v1964_v32, %v1680_v33 }
  0x82   :  { %1078 = vmatpush.bf16.msrb.mxu3 %v1787_v45  ;;  %v2001_v45 = vld [vmem:[#allocation7 + $0x28] sm:$0xff] }
  0x83   :  { %1040 = vmatpush.bf16.msrb.mxu0 %v1587_v6 }
  0x84   :  { %1053 = vmatpush.bf16.msrb.mxu1 %v1651_v41 }
  0x85   :  { %1066 = vmatpush.bf16.msrb.mxu2 %v1715_v7 }
  0x86   :  { %1079 = vmatpush.bf16.msrb.mxu3 %v1779_v53 }
  0x87   :  { %1041 = vmatpush.bf16.msrb.mxu0 %v1579_v60 }
  0x88   :  { %1054 = vmatpush.bf16.msrb.mxu1 %v1643_v61 }
  0x89   :  { %1067 = vmatpush.bf16.msrb.mxu2 %v1707_v62 }
  0x8a   :  { %1080 = vmatpush.bf16.msrb.mxu3 %v1771_v2 }
  0x8b   :  { %1042 = vmatpush.bf16.msrb.mxu0 %v1571_v11 }
  0x8c   :  { %1055 = vmatpush.bf16.msrb.mxu1 %v1635_v12 }
  0x8d   :  { %1068 = vmatpush.bf16.msrb.mxu2 %v1699_v13  ;;  %v2009_v13 = vld [vmem:[#allocation8 + $0x28] sm:$0xff] }
  0x8e   :  { %1081 = vmatpush.bf16.msrb.mxu3 %v1763_v17  ;;  %v2007_v17 = vld [vmem:[#allocation8 + $0x18] sm:$0xff] }
  0x8f   :  { %1043 = vmatpush.bf16.msrb.mxu0 %v1563_v23  ;;  %v2005_v23 = vld [vmem:[#allocation8 + $0x8] sm:$0xff] }
  0x90   :  { %1056 = vmatpush.bf16.msrb.mxu1 %v1627_v24 }
  0x91   :  { %1069 = vmatpush.bf16.msrb.mxu2 %v1691_v25 }
  0x92   :  { %1082 = vmatpush.bf16.msrb.mxu3 %v1755_v29 }
  0x93   :  { %1044 = vmatpush.bf16.msrb.mxu0 %v1555_v38 }
  0x94   :  { %1057 = vmatpush.bf16.msrb.mxu1 %v1619_v39 }
  0x95   :  { %1070 = vmatpush.bf16.msrb.mxu2 %v1683_v42 }
  0x96   :  { %1083 = vmatpush.bf16.msrb.mxu3 %v1747_v43  ;;  %1045 = vmatmul.bf16.vlgmr.msrb.gmra.mxu0 %v2234_v35 }
  0x97   :  { %1058 = vmatmul.bf16.vlgmr.msrb.gmra.mxu1 %v2238_v40  ;;  %1187 = vmatpush.bf16.msra.mxu0 %v2011_v1 }
  0x98   :  { %1071 = vmatmul.bf16.vlgmr.msrb.gmra.mxu2 %v2232_v31  ;;  %1248 = vmatpush.bf16.msra.mxu1 %v2003_v44  ;;  %v235_v31 = vld [vmem:[%s2274_s3] sm:$0x3] }
  0x99   :  { %1084 = vmatmul.bf16.vlgmr.msrb.gmra.mxu3 %v2236_v36  ;;  %v1997_v36 = vld [vmem:[#allocation7 + $0x8] sm:$0xff]  ;;  %v237_v6 = vperm.slane %v235_v31, 0  ;;  %v238_v27 = vperm.slane %v235_v31, 1 }
  0x9b   :  { %1188 = vmatpush.bf16.msra.mxu0 %v2010_v10 }
  0x9c   :  { %1249 = vmatpush.bf16.msra.mxu1 %v2002_v57 }
  0x9f   :  { %1189 = vmatpush.bf16.msra.mxu0 %v2009_v13 }
  0xa0   :  { %1250 = vmatpush.bf16.msra.mxu1 %v2001_v45 }
  0xa3   :  { %1190 = vmatpush.bf16.msra.mxu0 %v2008_v16 }
  0xa4   :  { %1251 = vmatpush.bf16.msra.mxu1 %v2000_v46 }
  0xa7   :  { %1191 = vmatpush.bf16.msra.mxu0 %v2007_v17 }
  0xa8   :  { %1252 = vmatpush.bf16.msra.mxu1 %v1999_v47 }
  0xab   :  { %1192 = vmatpush.bf16.msra.mxu0 %v2006_v20 }
  0xac   :  { %1253 = vmatpush.bf16.msra.mxu1 %v1998_v5 }
  0xaf   :  { %1193 = vmatpush.bf16.msra.mxu0 %v2005_v23 }
  0xb0   :  { %1254 = vmatpush.bf16.msra.mxu1 %v1997_v36 }
  0xb3   :  { %v890_v48 = vpop.f32.mrf.mxu0  ;;  %1194 = vmatpush.bf16.msra.mxu0 %v2004_v26 }
  0xb4   :  { %v903_v49 = vpop.f32.mrf.mxu1  ;;  %1255 = vmatpush.bf16.msra.mxu1 %v1996_v50  ;;  %v891_v52 = vadd.f32 %v890_v48, %v237_v6 }
  0xb6   :  { %v904_v54 = vadd.f32 %v903_v49, %v891_v52 }
  0xbb   :  { %v916_v35 = vpop.f32.mrf.mxu2  ;;  %v892_v41 = vpop.f32.mrf.mxu0 }
  0xbc   :  { %v929_v40 = vpop.f32.mrf.mxu3  ;;  %v905_v7 = vpop.f32.mrf.mxu1  ;;  %v917_v55 = vadd.f32 %v916_v35, %v904_v54  ;;  %v2023_v41 = vld [vmem:[%s2278_s7] ss:$0 sm:$0xff] }
  0xbd   :  { %v2024_v7 = vld [vmem:[%s2277_s6] ss:$0 sm:$0xff] }
  0xbe   :  { %v930_v56 = vadd.f32 %v929_v40, %v917_v55 }
  0xc3   :  { %v918_v51 = vpop.f32.mrf.mxu2 }
  0xc4   :  { %v931_v53 = vpop.f32.mrf.mxu3 }
  0xc6   :  { %v1096_v4 = vpop.permute.xlu0 %1095 }
  0xce   :  { %v1103_v49 = vpop.permute.xlu0 %1102 }
  0xcf   :  { %v1270_v52 = vmul.f32 %v2023_v41, %v1103_v49 }
  0xd3   :  { %v942_v58 = vpop.f32.mrf.mxu0 }
  0xd4   :  { %v943_v59 = vadd.f32 %v942_v58, %v930_v56  ;;  %v955_v60 = vpop.f32.mrf.mxu1 }
  0xd6   :  { %v956_v61 = vadd.f32 %v955_v60, %v943_v59 }
  0xdb   :  { %v968_v62 = vpop.f32.mrf.mxu2  ;;  %v944_v3 = vpop.f32.mrf.mxu0 }
  0xdc   :  { %v969_v63 = vadd.f32 %v968_v62, %v956_v61  ;;  %v981_v0 = vpop.f32.mrf.mxu3  ;;  %v957_v8 = vpop.f32.mrf.mxu1 }
  0xde   :  { %v982_v2 = vadd.f32 %v981_v0, %v969_v63 }
  0xe0   :  { %v1089_v9 = vmax.f32 %v982_v2, 0.0 }
  0xe2   :  { %v1098_v11 = vmul.f32 %v1096_v4, %v1089_v9 }
  0xe3   :  { %v970_v12 = vpop.f32.mrf.mxu2 }
  0xe4   :  { %v1099_v14 = vpack.c.bf16 %v1098_v11, %v1098_v11  ;;  %v983_v15 = vpop.f32.mrf.mxu3 }
  0xe6   :  { %1256 = vmatmul.bf16.vlgmr.msra.gmra.mxu1 %v1099_v14 }
  0xf3   :  { %v994_v18 = vpop.f32.mrf.mxu0 }
  0xf4   :  { %v1007_v19 = vpop.f32.mrf.mxu1  ;;  %v995_v30 = vadd.f32 %v994_v18, %v238_v27 }
  0xf6   :  { %v1008_v32 = vadd.f32 %v1007_v19, %v995_v30 }
  0xfb   :  { %v1020_v21 = vpop.f32.mrf.mxu2  ;;  %v996_v24 = vpop.f32.mrf.mxu0 }
  0xfc   :  { %v1033_v22 = vpop.f32.mrf.mxu3  ;;  %v1009_v25 = vpop.f32.mrf.mxu1  ;;  %v1021_v33 = vadd.f32 %v1020_v21, %v1008_v32 }
  0xfe   :  { %v1034_v34 = vadd.f32 %v1033_v22, %v1021_v33 }
 0x103   :  { %v1022_v28 = vpop.f32.mrf.mxu2 }
 0x104   :  { %v1035_v29 = vpop.f32.mrf.mxu3 }
 0x113   :  { %v1046_v37 = vpop.f32.mrf.mxu0 }
 0x114   :  { %v1059_v38 = vpop.f32.mrf.mxu1  ;;  %v1047_v39 = vadd.f32 %v1046_v37, %v1034_v34 }
 0x116   :  { %v1060_v42 = vadd.f32 %v1059_v38, %v1047_v39 }
 0x11b   :  { %v1072_v43 = vpop.f32.mrf.mxu2  ;;  %v1048_v45 = vpop.f32.mrf.mxu0 }
 0x11c   :  { %v1073_v44 = vadd.f32 %v1072_v43, %v1060_v42  ;;  %v1085_v57 = vpop.f32.mrf.mxu3  ;;  %v1061_v46 = vpop.f32.mrf.mxu1 }
 0x11e   :  { %v1086_v47 = vadd.f32 %v1085_v57, %v1073_v44 }
 0x120   :  { %v1090_v48 = vmax.f32 %v1086_v47, 0.0 }
 0x122   :  { %v1105_v5 = vmul.f32 %v1103_v49, %v1090_v48 }
 0x123   :  { %v1074_v35 = vpop.f32.mrf.mxu2 }
 0x124   :  { %v1106_v31 = vpack.c.bf16 %v1105_v5, %v1105_v5  ;;  %v1087_v36 = vpop.f32.mrf.mxu3 }
 0x126   :  { %1195 = vmatmul.bf16.vlgmr.msra.gmra.mxu0 %v1106_v31 }
 0x163   :  { %v1257_v40 = vpop.f32.mrf.mxu1 }
 0x16b   :  { %v1259_v6 = vpop.f32.mrf.mxu1 }
 0x1a3   :  { %v1196_v50 = vpop.f32.mrf.mxu0 }
 0x1a4   :  { %v1258_v51 = vadd.f32 %v1257_v40, %v1196_v50 }
 0x1a6   :  { %v1265_v53 = vadd.f32 %v2024_v7, %v1258_v51 }
 0x1a8   :  { %v1271_v54 = vadd.f32 %v1270_v52, %v1265_v53 }
 0x1aa   :  { %1272 = vst [vmem:[#allocation10] sm:$0xff] %v1271_v54 }
 0x1ab   :  { %v1198_v55 = vpop.f32.mrf.mxu0  ;;  %1283 = dma.vmem_to_hbm [thread:$0]  %s1279_s10, 128, %s1281_s13, [#allocation4]  }
 0x1ac   :  { %2151 = dma.done.wait [#allocation4], 128  }
 0x1ad   :  { %2152 = vsyncadd [#allocation4], 4294967168 }
 0x1ae   :  { %1288 = vsyncpa [#allocation3], 1 }
 0x1af   :  { %1289 = vsyncpa [#allocation6], 1 }
 0x1b0   :  { %1290 = vsyncpa [#allocation9], 1 }
 0x1b1   :  { %1291 = vsyncpa [#allocation4], 1 }

</bundles_post_ra>
